<compile_context>
chip_gen: v5e
topology: v5e:2x2
jax: 0.10.0
libtpu: 0.0.40
codegen_flags: <defaults>
</compile_context>

<pallas_src>
import functools

import jax
import jax.numpy as jnp
from jax.experimental import pallas as pl
from jax.experimental.pallas import tpu as pltpu


def _round_up(v, m):
    return -(-v // m) * m


def _lora_qkv_kernel(x_ref, wqkv_ref, bqkv_ref, apack_ref, bpack_ref, out_ref,
                     *, dim, compute_dtype):
    """One row tile of the fused LoRA-QKV projection.

    out[:, :C]   = x @ Wq + (x @ a_q) @ b_q + bias_q
    out[:, C:2C] = x @ Wk                   + bias_k
    out[:, 2C:]  = x @ Wv + (x @ a_v) @ b_v + bias_v
    """
    # In-kernel cast: free VPU work hidden under the MXU; avoids an extra
    # full-array XLA cast pass over x in HBM before the kernel runs.
    x = x_ref[...].astype(compute_dtype)                                  # (TM, C)

    # Single f32 accumulator chain — no separate (TM, 3C) base/delta temps.
    acc = jnp.dot(x, wqkv_ref[...], preferred_element_type=jnp.float32)   # (TM, 3C)

    # Packed LoRA: lane-dense (C, RP) down-proj then (RP, 2C) up-proj.
    mid = jnp.dot(x, apack_ref[...], preferred_element_type=jnp.float32)  # (TM, RP)
    delta = jnp.dot(mid.astype(compute_dtype), bpack_ref[...],
                    preferred_element_type=jnp.float32)                   # (TM, 2C)

    bias = bqkv_ref[...]                                                  # (1, 3C) f32

    # Epilogue: three lane-contiguous stores (each `dim` wide; 128-aligned for
    # real SAM dims).  new_q -> cols [:C], new_v -> cols [2C:].
    out_ref[:, :dim] = (acc[:, :dim] + delta[:, :dim]
                        + bias[:, :dim]).astype(out_ref.dtype)
    out_ref[:, dim:2 * dim] = (acc[:, dim:2 * dim]
                               + bias[:, dim:2 * dim]).astype(out_ref.dtype)
    out_ref[:, 2 * dim:] = (acc[:, 2 * dim:] + delta[:, dim:]
                            + bias[:, 2 * dim:]).astype(out_ref.dtype)


def lora_qkv(x, w_qkv, b_qkv, a_q, b_q, a_v, b_v, *,
             tile_m=None, compute_dtype=jnp.bfloat16, out_dtype=None):
    """LoRA-augmented QKV projection.

    x:       (B, H, W, C)   channels-last activations (any float dtype)
    w_qkv:   (C, 3C)        base qkv weight, already transposed to (in, out)
    b_qkv:   (3C,)          base qkv bias
    a_q/a_v: (C, r)         LoRA down-projections (transposed)
    b_q/b_v: (r, C)         LoRA up-projections   (transposed)
    out_dtype defaults to compute_dtype (bf16): the (M,3C) store dominates HBM
    traffic; request jnp.float32 explicitly if full-precision output is needed.
    """
    B, H, W, C = x.shape
    r = a_q.shape[1]
    n_out = 3 * C
    out_dtype = compute_dtype if out_dtype is None else out_dtype

    M = B * H * W
    x2 = x.reshape(M, C)                     # metadata-only; no pad, no cast

    # --- Pack LoRA weights lane-dense ---------------------------------------
    # A_pack = [a_q | a_v | 0...] : (C, RP), RP >= 128 -> full-lane intermediate.
    # B_pack : (RP, 2C) with b_q in rows[:r], cols[:C] and b_v in rows[r:2r],
    # cols[C:], so (x @ A_pack) @ B_pack == [new_q | new_v] (no zero middle).
    rp = max(128, _round_up(2 * r, 128))
    a_pack = jnp.zeros((C, rp), jnp.float32)
    a_pack = a_pack.at[:, :r].set(a_q.astype(jnp.float32))
    a_pack = a_pack.at[:, r:2 * r].set(a_v.astype(jnp.float32))
    b_pack = jnp.zeros((rp, 2 * C), jnp.float32)
    b_pack = b_pack.at[:r, :C].set(b_q.astype(jnp.float32))
    b_pack = b_pack.at[r:2 * r, C:].set(b_v.astype(jnp.float32))

    w_qkv_c = w_qkv.astype(compute_dtype)
    a_pack = a_pack.astype(compute_dtype)
    b_pack = b_pack.astype(compute_dtype)
    bias2 = b_qkv.reshape(1, n_out).astype(jnp.float32)

    xb = jnp.dtype(x.dtype).itemsize
    cb = jnp.dtype(compute_dtype).itemsize
    ob = jnp.dtype(out_dtype).itemsize

    # --- Per-generation VMEM limit & row tile --------------------------------
    try:
        vmem_cap = int(pltpu.get_tpu_info().vmem_capacity_bytes)
    except Exception:
        vmem_cap = 128 * 1024 * 1024         # v5e/v6e default if query fails
    # <= ~48 MiB on v7x (64 MiB/TC physical); ~96 MiB on v5e/v6e (128 MiB/TC).
    vmem_limit = int(min((vmem_cap * 3) // 4, 100 * 1024 * 1024))

    weight_bytes = (C * n_out * cb + n_out * 4
                    + C * rp * cb + rp * 2 * C * cb)   # single-buffered weights

    def _tile_bytes(tm):
        return (2 * tm * C * xb                        # x, double-buffered
                + 2 * tm * n_out * ob                  # out, double-buffered
                + tm * (n_out + rp + 2 * C) * 4)       # f32 acc / mid / delta

    if tile_m is None:
        budget = (vmem_limit * 3) // 4                 # headroom for scratch
        tile_m = 128
        for cand in (1024, 768, 512, 384, 256, 128):
            if weight_bytes + _tile_bytes(cand) <= budget:
                tile_m = cand
                break
    tm = _round_up(min(tile_m, M), 8)                  # sublane-aligned tile
    n_tiles = pl.cdiv(M, tm)                           # ragged last tile: OOB
                                                       # output rows are masked

    cost = pl.CostEstimate(
        flops=int(2 * M * C * n_out                    # base qkv matmul
                  + 2 * M * C * rp                     # x @ A_pack
                  + 2 * M * rp * 2 * C),               # mid @ B_pack
        transcendentals=0,
        bytes_accessed=int(M * C * xb + C * n_out * cb + n_out * 4
                           + C * rp * cb + rp * 2 * C * cb
                           + M * n_out * ob),
    )

    kernel = functools.partial(_lora_qkv_kernel, dim=C,
                               compute_dtype=compute_dtype)

    def _call(single_buffer_weights):
        if single_buffer_weights:
            def wspec(shape):
                return pl.BlockSpec(shape, lambda i: (0, 0),
                                    pipeline_mode=pl.Buffered(1))
        else:
            def wspec(shape):
                return pl.BlockSpec(shape, lambda i: (0, 0))
        out = pl.pallas_call(
            kernel,
            out_shape=jax.ShapeDtypeStruct((M, n_out), out_dtype),
            grid_spec=pltpu.PrefetchScalarGridSpec(
                num_scalar_prefetch=0,
                grid=(n_tiles,),
                in_specs=[
                    pl.BlockSpec((tm, C), lambda i: (i, 0)),   # x: streamed
                    wspec((C, n_out)),                         # W_qkv: resident
                    wspec((1, n_out)),                         # bias: resident
                    wspec((C, rp)),                            # A_pack: resident
                    wspec((rp, 2 * C)),                        # B_pack: resident
                ],
                out_specs=pl.BlockSpec((tm, n_out), lambda i: (i, 0)),
            ),
            compiler_params=pltpu.CompilerParams(
                dimension_semantics=("parallel",),   # megacore-shard row tiles
                vmem_limit_bytes=vmem_limit,
            ),
            cost_estimate=cost,
        )(x2, w_qkv_c, bias2, a_pack, b_pack)
        return jax.block_until_ready(out)

    try:
        out = _call(True)       # single-buffer the grid-invariant weights
    except Exception:
        out = _call(False)      # fallback if pipeline_mode=Buffered(1) unsupported

    return out.reshape(B, H, W, n_out)


def _reference(x, w_qkv, b_qkv, a_q, b_q, a_v, b_v):
    """Pure-JAX reference mirroring the PyTorch forward."""
    dim = x.shape[-1]
    qkv = jnp.einsum("bhwc,cd->bhwd", x, w_qkv) + b_qkv
    new_q = jnp.einsum("bhwr,rc->bhwc", jnp.einsum("bhwc,cr->bhwr", x, a_q), b_q)
    new_v = jnp.einsum("bhwr,rc->bhwc", jnp.einsum("bhwc,cr->bhwr", x, a_v), b_v)
    qkv = qkv.at[..., :dim].add(new_q)
    qkv = qkv.at[..., -dim:].add(new_v)
    return qkv


if __name__ == "__main__":
    B, H, W, C, R = 2, 8, 8, 32, 4   # dim=32, LoRA rank=4  -> M = 128 rows

    key = jax.random.PRNGKey(0)
    kx, kw, kb, kaq, kbq, kav, kbv = jax.random.split(key, 7)

    x = jax.random.normal(kx, (B, H, W, C), dtype=jnp.float32)

    # nn.Linear(dim, 3*dim, bias=True) weight is (3C, C) in torch; store transposed.
    w_qkv = jax.random.normal(kw, (C, 3 * C), dtype=jnp.float32) * 0.05
    b_qkv = jax.random.normal(kb, (3 * C,), dtype=jnp.float32) * 0.05
    # linear_a_*: Linear(dim, r, bias=False); linear_b_*: Linear(r, dim, bias=False)
    a_q = jax.random.normal(kaq, (C, R), dtype=jnp.float32) * 0.05
    b_q = jax.random.normal(kbq, (R, C), dtype=jnp.float32) * 0.05
    a_v = jax.random.normal(kav, (C, R), dtype=jnp.float32) * 0.05
    b_v = jax.random.normal(kbv, (R, C), dtype=jnp.float32) * 0.05

    ref = _reference(x, w_qkv, b_qkv, a_q, b_q, a_v, b_v)

    # 1) f32 compute + f32 out, small tile -> multi-tile grid with a ragged
    #    (masked) last row tile, no wrapper-side padding.  Bit-tight check.
    out_f32_tiled = jax.block_until_ready(
        lora_qkv(x, w_qkv, b_qkv, a_q, b_q, a_v, b_v,
                 tile_m=48, compute_dtype=jnp.float32, out_dtype=jnp.float32))
    assert out_f32_tiled.shape == (B, H, W, 3 * C)
    assert jnp.allclose(out_f32_tiled, ref, atol=1e-4, rtol=1e-4)

    # 2) f32 compute + f32 out, auto tile (single-tile grid here).
    out_f32 = jax.block_until_ready(
        lora_qkv(x, w_qkv, b_qkv, a_q, b_q, a_v, b_v,
                 compute_dtype=jnp.float32, out_dtype=jnp.float32))
    assert jnp.allclose(out_f32, ref, atol=1e-4, rtol=1e-4)

    # 3) Default optimized path: bf16 MXU compute, f32 accumulation, bf16 out.
    out_bf16 = jax.block_until_ready(
        lora_qkv(x, w_qkv, b_qkv, a_q, b_q, a_v, b_v))
    assert out_bf16.shape == (B, H, W, 3 * C)
    assert out_bf16.dtype == jnp.bfloat16
    assert jnp.allclose(out_bf16.astype(jnp.float32), ref, atol=3e-2, rtol=3e-2)

    print("KERNEL_OK")
</pallas_src>

<mosaic_0001>
module attributes {stable_mosaic.version = 11 : i64} {
  func.func @_lora_qkv_kernel(%arg0: i32, %arg1: memref<48x32xf32, #tpu.memory_space<vmem>>, %arg2: memref<32x96xf32, #tpu.memory_space<vmem>>, %arg3: memref<1x96xf32, #tpu.memory_space<vmem>>, %arg4: memref<32x128xf32, #tpu.memory_space<vmem>>, %arg5: memref<128x64xf32, #tpu.memory_space<vmem>>, %arg6: memref<48x96xf32, #tpu.memory_space<vmem>>) attributes {dimension_semantics = [#tpu.dimension_semantics<parallel>], iteration_bounds = array<i64: 3>, scalar_prefetch = 0 : i64, scratch_operands = 0 : i64, tpu.core_type = #tpu.core_type<tc>, window_params = [{transform_indices = @transform_0, window_bounds = array<i64: 48, 32>}, {pipeline_mode = #tpu.pipeline_mode<synchronous>, transform_indices = @transform_1, window_bounds = array<i64: 32, 96>}, {pipeline_mode = #tpu.pipeline_mode<synchronous>, transform_indices = @transform_2, window_bounds = array<i64: 1, 96>}, {pipeline_mode = #tpu.pipeline_mode<synchronous>, transform_indices = @transform_3, window_bounds = array<i64: 32, 128>}, {pipeline_mode = #tpu.pipeline_mode<synchronous>, transform_indices = @transform_4, window_bounds = array<i64: 128, 64>}, {transform_indices = @transform_5, window_bounds = array<i64: 48, 96>}]} {
    %c0 = arith.constant 0 : index
    %c0_0 = arith.constant 0 : index
    %0 = vector.load %arg1[%c0, %c0_0] : memref<48x32xf32, #tpu.memory_space<vmem>>, vector<48x32xf32>
    %c0_1 = arith.constant 0 : index
    %c0_2 = arith.constant 0 : index
    %1 = vector.load %arg2[%c0_1, %c0_2] : memref<32x96xf32, #tpu.memory_space<vmem>>, vector<32x96xf32>
    %cst = arith.constant dense<0.000000e+00> : vector<48x96xf32>
    %2 = tpu.matmul %0, %1, %cst {dimension_numbers = #tpu.dot_dimension_numbers<[1], [0], [0], [1], [0, 0, 1, 1], [], []>} : vector<48x32xf32>, vector<32x96xf32>, vector<48x96xf32> -> vector<48x96xf32>
    %c0_3 = arith.constant 0 : index
    %c0_4 = arith.constant 0 : index
    %3 = vector.load %arg4[%c0_3, %c0_4] : memref<32x128xf32, #tpu.memory_space<vmem>>, vector<32x128xf32>
    %cst_5 = arith.constant dense<0.000000e+00> : vector<48x128xf32>
    %4 = tpu.matmul %0, %3, %cst_5 {dimension_numbers = #tpu.dot_dimension_numbers<[1], [0], [0], [1], [0, 0, 1, 1], [], []>} : vector<48x32xf32>, vector<32x128xf32>, vector<48x128xf32> -> vector<48x128xf32>
    %c0_6 = arith.constant 0 : index
    %c0_7 = arith.constant 0 : index
    %5 = vector.load %arg5[%c0_6, %c0_7] : memref<128x64xf32, #tpu.memory_space<vmem>>, vector<128x64xf32>
    %cst_8 = arith.constant dense<0.000000e+00> : vector<48x64xf32>
    %6 = tpu.matmul %4, %5, %cst_8 {dimension_numbers = #tpu.dot_dimension_numbers<[1], [0], [0], [1], [0, 0, 1, 1], [], []>} : vector<48x128xf32>, vector<128x64xf32>, vector<48x64xf32> -> vector<48x64xf32>
    %c0_9 = arith.constant 0 : index
    %c0_10 = arith.constant 0 : index
    %7 = vector.load %arg3[%c0_9, %c0_10] : memref<1x96xf32, #tpu.memory_space<vmem>>, vector<1x96xf32>
    %8 = vector.extract_strided_slice %2 {offsets = [0, 0], sizes = [48, 32], strides = [1, 1]} : vector<48x96xf32> to vector<48x32xf32>
    %9 = vector.extract_strided_slice %6 {offsets = [0, 0], sizes = [48, 32], strides = [1, 1]} : vector<48x64xf32> to vector<48x32xf32>
    %10 = arith.addf %8, %9 : vector<48x32xf32>
    %11 = vector.extract_strided_slice %7 {offsets = [0, 0], sizes = [1, 32], strides = [1, 1]} : vector<1x96xf32> to vector<1x32xf32>
    %12 = vector.broadcast %11 : vector<1x32xf32> to vector<48x32xf32>
    %13 = arith.addf %10, %12 : vector<48x32xf32>
    %c0_11 = arith.constant 0 : index
    %c0_12 = arith.constant 0 : index
    %14 = vector.load %arg6[%c0_11, %c0_12] : memref<48x96xf32, #tpu.memory_space<vmem>>, vector<48x32xf32>
    tpu.vector_store %arg6[%c0_11, %c0_12], %13 {strides = array<i32>} : memref<48x96xf32, #tpu.memory_space<vmem>>, vector<48x32xf32>,
    %15 = vector.extract_strided_slice %2 {offsets = [0, 32], sizes = [48, 32], strides = [1, 1]} : vector<48x96xf32> to vector<48x32xf32>
    %16 = vector.extract_strided_slice %7 {offsets = [0, 32], sizes = [1, 32], strides = [1, 1]} : vector<1x96xf32> to vector<1x32xf32>
    %17 = vector.broadcast %16 : vector<1x32xf32> to vector<48x32xf32>
    %18 = arith.addf %15, %17 : vector<48x32xf32>
    %c0_13 = arith.constant 0 : index
    %c32 = arith.constant 32 : index
    %19 = vector.load %arg6[%c0_13, %c32] : memref<48x96xf32, #tpu.memory_space<vmem>>, vector<48x32xf32>
    tpu.vector_store %arg6[%c0_13, %c32], %18 {strides = array<i32>} : memref<48x96xf32, #tpu.memory_space<vmem>>, vector<48x32xf32>,
    %20 = vector.extract_strided_slice %2 {offsets = [0, 64], sizes = [48, 32], strides = [1, 1]} : vector<48x96xf32> to vector<48x32xf32>
    %21 = vector.extract_strided_slice %6 {offsets = [0, 32], sizes = [48, 32], strides = [1, 1]} : vector<48x64xf32> to vector<48x32xf32>
    %22 = arith.addf %20, %21 : vector<48x32xf32>
    %23 = vector.extract_strided_slice %7 {offsets = [0, 64], sizes = [1, 32], strides = [1, 1]} : vector<1x96xf32> to vector<1x32xf32>
    %24 = vector.broadcast %23 : vector<1x32xf32> to vector<48x32xf32>
    %25 = arith.addf %22, %24 : vector<48x32xf32>
    %c0_14 = arith.constant 0 : index
    %c64 = arith.constant 64 : index
    %26 = vector.load %arg6[%c0_14, %c64] : memref<48x96xf32, #tpu.memory_space<vmem>>, vector<48x32xf32>
    tpu.vector_store %arg6[%c0_14, %c64], %25 {strides = array<i32>} : memref<48x96xf32, #tpu.memory_space<vmem>>, vector<48x32xf32>,
    return
  }
  func.func @transform_0(%arg0: i32) -> (i32, i32) {
    %c0_i32 = arith.constant 0 : i32
    %c0_i32_0 = arith.constant 0 : i32
    return %arg0, %c0_i32 : i32, i32
  }
  func.func @transform_1(%arg0: i32) -> (i32, i32) {
    %c0_i32 = arith.constant 0 : i32
    %c0_i32_0 = arith.constant 0 : i32
    %c0_i32_1 = arith.constant 0 : i32
    return %c0_i32, %c0_i32_0 : i32, i32
  }
  func.func @transform_2(%arg0: i32) -> (i32, i32) {
    %c0_i32 = arith.constant 0 : i32
    %c0_i32_0 = arith.constant 0 : i32
    %c0_i32_1 = arith.constant 0 : i32
    return %c0_i32, %c0_i32_0 : i32, i32
  }
  func.func @transform_3(%arg0: i32) -> (i32, i32) {
    %c0_i32 = arith.constant 0 : i32
    %c0_i32_0 = arith.constant 0 : i32
    %c0_i32_1 = arith.constant 0 : i32
    return %c0_i32, %c0_i32_0 : i32, i32
  }
  func.func @transform_4(%arg0: i32) -> (i32, i32) {
    %c0_i32 = arith.constant 0 : i32
    %c0_i32_0 = arith.constant 0 : i32
    %c0_i32_1 = arith.constant 0 : i32
    return %c0_i32, %c0_i32_0 : i32, i32
  }
  func.func @transform_5(%arg0: i32) -> (i32, i32) {
    %c0_i32 = arith.constant 0 : i32
    %c0_i32_0 = arith.constant 0 : i32
    return %arg0, %c0_i32 : i32, i32
  }
}

module attributes {stable_mosaic.version = 11 : i64} {
  func.func @_lora_qkv_kernel(%arg0: i32, %arg1: memref<48x32xf32, #tpu.memory_space<vmem>>, %arg2: memref<32x96xf32, #tpu.memory_space<vmem>>, %arg3: memref<1x96xf32, #tpu.memory_space<vmem>>, %arg4: memref<32x128xf32, #tpu.memory_space<vmem>>, %arg5: memref<128x64xf32, #tpu.memory_space<vmem>>, %arg6: memref<48x96xf32, #tpu.memory_space<vmem>>) attributes {dimension_semantics = [#tpu.dimension_semantics<parallel>], iteration_bounds = array<i64: 3>, scalar_prefetch = 0 : i64, scratch_operands = 0 : i64, tpu.core_type = #tpu.core_type<tc>, window_params = [{transform_indices = @transform_0, window_bounds = array<i64: 48, 32>}, {pipeline_mode = #tpu.pipeline_mode<synchronous>, transform_indices = @transform_1, window_bounds = array<i64: 32, 96>}, {pipeline_mode = #tpu.pipeline_mode<synchronous>, transform_indices = @transform_2, window_bounds = array<i64: 1, 96>}, {pipeline_mode = #tpu.pipeline_mode<synchronous>, transform_indices = @transform_3, window_bounds = array<i64: 32, 128>}, {pipeline_mode = #tpu.pipeline_mode<synchronous>, transform_indices = @transform_4, window_bounds = array<i64: 128, 64>}, {transform_indices = @transform_5, window_bounds = array<i64: 48, 96>}]} {
    %c0 = arith.constant 0 : index
    %c0_0 = arith.constant 0 : index
    %0 = vector.load %arg1[%c0, %c0_0] : memref<48x32xf32, #tpu.memory_space<vmem>>, vector<48x32xf32>
    %c0_1 = arith.constant 0 : index
    %c0_2 = arith.constant 0 : index
    %1 = vector.load %arg2[%c0_1, %c0_2] : memref<32x96xf32, #tpu.memory_space<vmem>>, vector<32x96xf32>
    %cst = arith.constant dense<0.000000e+00> : vector<48x96xf32>
    %2 = tpu.matmul %0, %1, %cst {dimension_numbers = #tpu.dot_dimension_numbers<[1], [0], [0], [1], [0, 0, 1, 1], [], []>} : vector<48x32xf32>, vector<32x96xf32>, vector<48x96xf32> -> vector<48x96xf32>
    %c0_3 = arith.constant 0 : index
    %c0_4 = arith.constant 0 : index
    %3 = vector.load %arg4[%c0_3, %c0_4] : memref<32x128xf32, #tpu.memory_space<vmem>>, vector<32x128xf32>
    %cst_5 = arith.constant dense<0.000000e+00> : vector<48x128xf32>
    %4 = tpu.matmul %0, %3, %cst_5 {dimension_numbers = #tpu.dot_dimension_numbers<[1], [0], [0], [1], [0, 0, 1, 1], [], []>} : vector<48x32xf32>, vector<32x128xf32>, vector<48x128xf32> -> vector<48x128xf32>
    %c0_6 = arith.constant 0 : index
    %c0_7 = arith.constant 0 : index
    %5 = vector.load %arg5[%c0_6, %c0_7] : memref<128x64xf32, #tpu.memory_space<vmem>>, vector<128x64xf32>
    %cst_8 = arith.constant dense<0.000000e+00> : vector<48x64xf32>
    %6 = tpu.matmul %4, %5, %cst_8 {dimension_numbers = #tpu.dot_dimension_numbers<[1], [0], [0], [1], [0, 0, 1, 1], [], []>} : vector<48x128xf32>, vector<128x64xf32>, vector<48x64xf32> -> vector<48x64xf32>
    %c0_9 = arith.constant 0 : index
    %c0_10 = arith.constant 0 : index
    %7 = vector.load %arg3[%c0_9, %c0_10] : memref<1x96xf32, #tpu.memory_space<vmem>>, vector<1x96xf32>
    %8 = vector.extract_strided_slice %2 {offsets = [0, 0], sizes = [48, 32], strides = [1, 1]} : vector<48x96xf32> to vector<48x32xf32>
    %9 = vector.extract_strided_slice %6 {offsets = [0, 0], sizes = [48, 32], strides = [1, 1]} : vector<48x64xf32> to vector<48x32xf32>
    %10 = arith.addf %8, %9 : vector<48x32xf32>
    %11 = vector.extract_strided_slice %7 {offsets = [0, 0], sizes = [1, 32], strides = [1, 1]} : vector<1x96xf32> to vector<1x32xf32>
    %12 = vector.broadcast %11 : vector<1x32xf32> to vector<48x32xf32>
    %13 = arith.addf %10, %12 : vector<48x32xf32>
    %c0_11 = arith.constant 0 : index
    %c0_12 = arith.constant 0 : index
    %14 = vector.load %arg6[%c0_11, %c0_12] : memref<48x96xf32, #tpu.memory_space<vmem>>, vector<48x32xf32>
    tpu.vector_store %arg6[%c0_11, %c0_12], %13 {strides = array<i32>} : memref<48x96xf32, #tpu.memory_space<vmem>>, vector<48x32xf32>,
    %15 = vector.extract_strided_slice %2 {offsets = [0, 32], sizes = [48, 32], strides = [1, 1]} : vector<48x96xf32> to vector<48x32xf32>
    %16 = vector.extract_strided_slice %7 {offsets = [0, 32], sizes = [1, 32], strides = [1, 1]} : vector<1x96xf32> to vector<1x32xf32>
    %17 = vector.broadcast %16 : vector<1x32xf32> to vector<48x32xf32>
    %18 = arith.addf %15, %17 : vector<48x32xf32>
    %c0_13 = arith.constant 0 : index
    %c32 = arith.constant 32 : index
    %19 = vector.load %arg6[%c0_13, %c32] : memref<48x96xf32, #tpu.memory_space<vmem>>, vector<48x32xf32>
    tpu.vector_store %arg6[%c0_13, %c32], %18 {strides = array<i32>} : memref<48x96xf32, #tpu.memory_space<vmem>>, vector<48x32xf32>,
    %20 = vector.extract_strided_slice %2 {offsets = [0, 64], sizes = [48, 32], strides = [1, 1]} : vector<48x96xf32> to vector<48x32xf32>
    %21 = vector.extract_strided_slice %6 {offsets = [0, 32], sizes = [48, 32], strides = [1, 1]} : vector<48x64xf32> to vector<48x32xf32>
    %22 = arith.addf %20, %21 : vector<48x32xf32>
    %23 = vector.extract_strided_slice %7 {offsets = [0, 64], sizes = [1, 32], strides = [1, 1]} : vector<1x96xf32> to vector<1x32xf32>
    %24 = vector.broadcast %23 : vector<1x32xf32> to vector<48x32xf32>
    %25 = arith.addf %22, %24 : vector<48x32xf32>
    %c0_14 = arith.constant 0 : index
    %c64 = arith.constant 64 : index
    %26 = vector.load %arg6[%c0_14, %c64] : memref<48x96xf32, #tpu.memory_space<vmem>>, vector<48x32xf32>
    tpu.vector_store %arg6[%c0_14, %c64], %25 {strides = array<i32>} : memref<48x96xf32, #tpu.memory_space<vmem>>, vector<48x32xf32>,
    return
  }
  func.func @transform_0(%arg0: i32) -> (i32, i32) {
    %c0_i32 = arith.constant 0 : i32
    %c0_i32_0 = arith.constant 0 : i32
    return %arg0, %c0_i32 : i32, i32
  }
  func.func @transform_1(%arg0: i32) -> (i32, i32) {
    %c0_i32 = arith.constant 0 : i32
    %c0_i32_0 = arith.constant 0 : i32
    %c0_i32_1 = arith.constant 0 : i32
    return %c0_i32, %c0_i32_0 : i32, i32
  }
  func.func @transform_2(%arg0: i32) -> (i32, i32) {
    %c0_i32 = arith.constant 0 : i32
    %c0_i32_0 = arith.constant 0 : i32
    %c0_i32_1 = arith.constant 0 : i32
    return %c0_i32, %c0_i32_0 : i32, i32
  }
  func.func @transform_3(%arg0: i32) -> (i32, i32) {
    %c0_i32 = arith.constant 0 : i32
    %c0_i32_0 = arith.constant 0 : i32
    %c0_i32_1 = arith.constant 0 : i32
    return %c0_i32, %c0_i32_0 : i32, i32
  }
  func.func @transform_4(%arg0: i32) -> (i32, i32) {
    %c0_i32 = arith.constant 0 : i32
    %c0_i32_0 = arith.constant 0 : i32
    %c0_i32_1 = arith.constant 0 : i32
    return %c0_i32, %c0_i32_0 : i32, i32
  }
  func.func @transform_5(%arg0: i32) -> (i32, i32) {
    %c0_i32 = arith.constant 0 : i32
    %c0_i32_0 = arith.constant 0 : i32
    return %arg0, %c0_i32 : i32, i32
  }
}

</mosaic_0001>

<bundles_post_ra>
// kernel: tpu_custom_call.1
= control target key start
LH: loop header
LB: loop body
LE: loop exit
PB: predicated region body
PF: predicated region fallthrough
CT: control target
= control target key end

     0   :  { %s979_s18 = smov 0   ;;  %s981_s19 = smov 0   ;;  %s1244_s0 = inlined_call_operand.vmem [shape: f32[128,32], index: 0, kind: input, shape index: {}]   ;;  %s1245_s1 = inlined_call_operand.vmem [shape: f32[32,96], index: 1, kind: input, shape index: {}]   ;;  %s1246_s2 = inlined_call_operand.vmem [shape: f32[1,96], index: 2, kind: input, shape index: {}]   ;;  %s1247_s3 = inlined_call_operand.vmem [shape: f32[32,128], index: 3, kind: input, shape index: {}]   ;;  %s1248_s4 = inlined_call_operand.vmem [shape: f32[128,64], index: 4, kind: input, shape index: {}]   ;;  %s1249_s5 = inlined_call_operand.vmem [shape: f32[128,96], index: 5, kind: output, shape index: {}]  }
   0x1   :  { %s983_s20 = smov 0  }
   0x2 LB: > { %s992_s21 = sadd.s32 4294967295, %s914_s20   ;;  %s994_s22 = sadd.s32 1, %s914_s20   ;;  %s914_s20 = sphi %s983_s20, %s1256_s20   ;;  %s910_s19 = sphi %s981_s19, %s1255_s19   ;;  %s906_s18 = sphi %s979_s18, %s1254_s18  }
   0x3   : > { %s129_s23 = ssub.s32 %s914_s20, %s994_s22  ;;  %s132_s24 = sadd.s32 1, %s910_s19 }
   0x4   : > { %p130_p0 = scmp.eq.s32.totalorder %s129_s23, 0  ;;  %p142_p1 = scmp.ne.s32.totalorder %s910_s19, %s906_s18 }
   0x5   : > { %p143_p2 = scmp.eq.s32.totalorder %s992_s21, 2  ;;  %p719_p3 = scmp.ge.s32.totalorder %s914_s20, 1 }
   0x6   : > { %s1002_s25 = scalar_select %p130_p0, %s910_s19, %s132_s24  }
   0x7   : > { %p1004_p4 = por %p143_p2, %p142_p1  ;;  %p196_p5 = scmp.lt.s32.totalorder %s914_s20, 4 }
   0x9   : > { %p197_p6 = pnand %p719_p3, %p196_p5 }
   0xa   : > { %s1015_s6 = smul.u32 (!%p197_p6), 6, %s992_s21  ;;  %s224_s27 = sand.u32 (!%p197_p6), 1, %s906_s18  }
   0xb   : > { %200 = sbr.rel (%p197_p6) target bundleno = 480 (0x1e0), region = 40  ;;  %s948_s7 = smov (!%p197_p6), 32  }
   0xc   : > { %p232_p7 = scmp.lt.s32.totalorder (!%p197_p6), %s1015_s6, 15  ;;  %s762_s28 = smul.u32 (!%p197_p6), 48, %s224_s27 }
   0xe   : > { %s1125_s8 = scalar_lea.vmem (!%p197_p6), [#allocation2], %s762_s28  }
  0x10   : > { %v313_v0 = vld [vmem:[%s1247_s3 + $0x18] sm:$0xff]  ;;  %v312_v1 = vld [vmem:[%s1247_s3 + $0x10] sm:$0xff]  ;;  %v311_v2 = vld [vmem:[%s1247_s3 + $0x8] sm:$0xff]  ;;  %s233_s11 = scalar_select %p232_p7, %s1015_s6, 15  ;;  %vm256_vm0 = vcmask 261120   ;;  %vm428_vm1 = vcmask 523520  }
  0x11   : > { %326 = vmatpush.msra.mxu1 %v313_v0  ;;  %v310_v3 = vld [vmem:[%s1247_s3] sm:$0xff]  ;;  %v364_v6 = vld [vmem:[%s1248_s4 + $0x78] sm:$0xff]  ;;  %v363_v7 = vld [vmem:[%s1248_s4 + $0x70] sm:$0xff]  ;;  %vm471_vm2 = vcmask 785920   ;;  %s486_s18 = ssub.s32 (%p1004_p4), 16, %s1015_s6  ;;  %s745_s9 = smul.u32 (%p1004_p4), 48, %s992_s21 }
  0x12   : > { %s720_s12 = sshll.u32 %s233_s11, 3  ;;  %365 = vmatpush.msra.mxu2 %v364_v6  ;;  %746 = vmatpush.msra.mxu3 %v364_v6  ;;  %v362_v8 = vld [vmem:[%s1248_s4 + $0x68] sm:$0xff]  ;;  %v361_v9 = vld [vmem:[%s1248_s4 + $0x60] sm:$0xff]  ;;  %v255_v11 = vld [vmem:[%s1245_s1 + $0x18] sm:$0xff]  ;;  %p487_p8 = scmp.lt.s32.totalorder (%p1004_p4), %s486_s18, 6 }
  0x13   : > { %327 = vmatpush.msra.mxu1 %v312_v1  ;;  %s1028_s15 = scalar_lea.vmem %s1244_s0, %s720_s12  ;;  %v360_v12 = vld [vmem:[%s1248_s4 + $0x58] sm:$0xff]  ;;  %287 = vmatpush.msra.mxu0 %v255_v11  ;;  %v359_v13 = vld [vmem:[%s1248_s4 + $0x50] sm:$0xff]  ;;  %v358_v14 = vld [vmem:[%s1248_s4 + $0x48] sm:$0xff]  ;;  %s1191_s12 = scalar_lea.vmem (%p1004_p4), %s1249_s5, %s745_s9  }
  0x14   : > { %v1031_v4 = vld [vmem:[%s1028_s15] sm:$0xff]  ;;  %v1036_v5 = vld [vmem:[%s1028_s15 + $0x8] sm:$0xff]  ;;  %366 = vmatpush.msra.mxu2 %v363_v7  ;;  %747 = vmatpush.msra.mxu3 %v363_v7  ;;  %v248_v10 = vld [vmem:[%s1028_s15 + $0x10] sm:$0xff] }
  0x15   : > { %328 = vmatpush.msra.mxu1 %v311_v2  ;;  %v357_v15 = vld [vmem:[%s1248_s4 + $0x40] sm:$0xff]  ;;  %v249_v16 = vld [vmem:[%s1028_s15 + $0x18] sm:$0xff]  ;;  %v355_v18 = vld [vmem:[%s1248_s4 + $0x30] sm:$0xff] }
  0x16   : > { %367 = vmatpush.msra.mxu2 %v362_v8  ;;  %748 = vmatpush.msra.mxu3 %v362_v8  ;;  %v356_v17 = vld [vmem:[%s1248_s4 + $0x38] sm:$0xff]  ;;  %v354_v19 = vld [vmem:[%s1248_s4 + $0x28] sm:$0xff]  ;;  %v353_v20 = vld [vmem:[%s1248_s4 + $0x20] sm:$0xff] }
  0x17   : > { %329 = vmatpush.msra.mxu1 %v310_v3  ;;  %v250_v21 = vld [vmem:[%s1028_s15 + $0x20] sm:$0xff]  ;;  %v352_v22 = vld [vmem:[%s1248_s4 + $0x18] sm:$0xff]  ;;  %v351_v23 = vld [vmem:[%s1248_s4 + $0x10] sm:$0xff] }
  0x18   : > { %727 = vmatmul.msk.f32.vlgmr.msra.gmra.mxu1 %vm256_vm0, %v1031_v4  ;;  %368 = vmatpush.msra.mxu2 %v361_v9  ;;  %v350_v24 = vld [vmem:[%s1248_s4 + $0x8] sm:$0xff]  ;;  %v349_v26 = vld [vmem:[%s1248_s4] sm:$0xff]  ;;  %v254_v27 = vld [vmem:[%s1245_s1 + $0x10] sm:$0xff] }
  0x19   : > { %749 = vmatpush.msra.mxu3 %v361_v9  ;;  %v251_v25 = vld [vmem:[%s1028_s15 + $0x28] sm:$0xff]  ;;  %288 = vmatpush.msra.mxu0 %v254_v27  ;;  %v252_v29 = vld [vmem:[%s1245_s1] sm:$0xff] }
  0x1a   : > { %369 = vmatpush.msra.mxu2 %v360_v12  ;;  %v253_v28 = vld [vmem:[%s1245_s1 + $0x8] sm:$0xff]  ;;  %v1120_v37 = vld [vmem:[%s1246_s2] ss:$0 sm:$0xff] }
  0x1b   : > { %750 = vmatpush.msra.mxu3 %v360_v12  ;;  %289 = vmatpush.msra.mxu0 %v253_v28 }
  0x1c   : > { %370 = vmatpush.msra.mxu2 %v359_v13 }
  0x1d   : > { %751 = vmatpush.msra.mxu3 %v359_v13  ;;  %290 = vmatpush.msra.mxu0 %v252_v29 }
  0x1e   : > { %371 = vmatpush.msra.mxu2 %v358_v14  ;;  %721 = vmatmul.msk.f32.vlgmr.msra.gmra.mxu0 %vm256_vm0, %v1031_v4 }
  0x1f   : > { %752 = vmatpush.msra.mxu3 %v358_v14 }
  0x20   : > { %728 = vmatmul.msk.f32.gmra.mxu1 %vm256_vm0, %v1036_v5  ;;  %372 = vmatpush.msra.mxu2 %v357_v15 }
  0x21   : > { %753 = vmatpush.msra.mxu3 %v357_v15 }
  0x22   : > { %373 = vmatpush.msra.mxu2 %v356_v17 }
  0x23   : > { %754 = vmatpush.msra.mxu3 %v356_v17 }
  0x24   : > { %374 = vmatpush.msra.mxu2 %v355_v18 }
  0x25   : > { %755 = vmatpush.msra.mxu3 %v355_v18 }
  0x26   : > { %375 = vmatpush.msra.mxu2 %v354_v19  ;;  %722 = vmatmul.msk.f32.gmra.mxu0 %vm256_vm0, %v1036_v5 }
  0x27   : > { %756 = vmatpush.msra.mxu3 %v354_v19 }
  0x28   : > { %729 = vmatmul.msk.f32.gmra.mxu1 %vm256_vm0, %v248_v10  ;;  %376 = vmatpush.msra.mxu2 %v353_v20 }
  0x29   : > { %757 = vmatpush.msra.mxu3 %v353_v20 }
  0x2a   : > { %377 = vmatpush.msra.mxu2 %v352_v22 }
  0x2b   : > { %758 = vmatpush.msra.mxu3 %v352_v22 }
  0x2c   : > { %378 = vmatpush.msra.mxu2 %v351_v23 }
  0x2d   : > { %759 = vmatpush.msra.mxu3 %v351_v23 }
  0x2e   : > { %379 = vmatpush.msra.mxu2 %v350_v24  ;;  %723 = vmatmul.msk.f32.gmra.mxu0 %vm256_vm0, %v248_v10 }
  0x2f   : > { %760 = vmatpush.msra.mxu3 %v350_v24 }
  0x30   : > { %730 = vmatmul.msk.f32.gmra.mxu1 %vm256_vm0, %v249_v16  ;;  %380 = vmatpush.msra.mxu2 %v349_v26 }
  0x31   : > { %761 = vmatpush.msra.mxu3 %v349_v26 }
  0x36   : > { %724 = vmatmul.msk.f32.gmra.mxu0 %vm256_vm0, %v249_v16 }
  0x38   : > { %731 = vmatmul.msk.f32.gmra.mxu1 %vm256_vm0, %v250_v21 }
  0x3e   : > { %725 = vmatmul.msk.f32.gmra.mxu0 %vm256_vm0, %v250_v21 }
  0x40   : > { %732 = vmatmul.msk.f32.gmra.mxu1 %vm256_vm0, %v251_v25 }
  0x46   : > { %726 = vmatmul.msk.f32.gmra.mxu0 %vm256_vm0, %v251_v25 }
  0x95   : > { %v331_v30 = vpop.f32.mrf.mxu1 }
  0x96   : > { %381 = vmatmul.f32.vlgmr.msra.gmra.mxu2 %v331_v30 }
  0x9b   : > { %v292_v36 = vpop.f32.mrf.mxu0 }
  0x9c   : > { %v422_v41 = vadd.f32 %v1120_v37, %v292_v36 }
  0x9d   : > { %v334_v31 = vpop.f32.mrf.mxu1 }
  0x9e   : > { %384 = vmatmul.f32.gmra.mxu2 %v334_v31 }
  0xa3   : > { %v295_v39 = vpop.f32.mrf.mxu0 }
  0xa4   : > { %v423_v45 = vadd.f32 %v1120_v37, %v295_v39 }
  0xa5   : > { %v337_v32 = vpop.f32.mrf.mxu1 }
  0xa6   : > { %387 = vmatmul.f32.gmra.mxu2 %v337_v32 }
  0xab   : > { %v298_v46 = vpop.f32.mrf.mxu0 }
  0xac   : > { %v424_v50 = vadd.f32 %v1120_v37, %v298_v46 }
  0xad   : > { %v340_v33 = vpop.f32.mrf.mxu1 }
  0xae   : > { %390 = vmatmul.f32.vlgmr.msra.gmra.mxu3 %v340_v33 }
  0xb3   : > { %v301_v52 = vpop.f32.mrf.mxu0 }
  0xb4   : > { %v425_v55 = vadd.f32 %v1120_v37, %v301_v52 }
  0xb5   : > { %v343_v34 = vpop.f32.mrf.mxu1 }
  0xb6   : > { %393 = vmatmul.f32.gmra.mxu3 %v343_v34 }
  0xbb   : > { %v304_v57 = vpop.f32.mrf.mxu0 }
  0xbc   : > { %v426_v60 = vadd.f32 %v1120_v37, %v304_v57 }
  0xbd   : > { %v346_v35 = vpop.f32.mrf.mxu1 }
  0xbe   : > { %396 = vmatmul.f32.gmra.mxu3 %v346_v35 }
  0xc3   : > { %v307_v62 = vpop.f32.mrf.mxu0 }
  0xc4   : > { %v427_v1 = vadd.f32 %v1120_v37, %v307_v62 }
 0x119   : > { %v382_v38 = vpop.f32.mrf.mxu2 }
 0x11a   : > { %v401_v40 = vadd.f32 %v382_v38, %v292_v36  ;;  %441 = vrot.lane.b32.xlu0 %v382_v38, %s948_s7 }
 0x11c   : > { %v410_v42 = vadd.f32 %v1120_v37, %v401_v40 }
 0x11e   : > { %416 = vst.msk [vmem:[%s1125_s8] sm:$0xff] %vm256_vm0, %v410_v42 }
 0x11f   : > { %429 = vst.msk [vmem:[%s1125_s8] sm:$0xff] %vm428_vm1, %v422_v41 }
 0x121   : > { %v385_v43 = vpop.f32.mrf.mxu2 }
 0x122   : > { %v402_v44 = vadd.f32 %v385_v43, %v295_v39  ;;  %443 = vrot.lane.b32.xlu0 %v385_v43, %s948_s7 }
 0x124   : > { %v411_v47 = vadd.f32 %v1120_v37, %v402_v44 }
 0x126   : > { %417 = vst.msk [vmem:[%s1125_s8 + $0x8] sm:$0xff] %vm256_vm0, %v411_v47 }
 0x127   : > { %430 = vst.msk [vmem:[%s1125_s8 + $0x8] sm:$0xff] %vm428_vm1, %v423_v45 }
 0x129   : > { %v388_v48 = vpop.f32.mrf.mxu2 }
 0x12a   : > { %v403_v49 = vadd.f32 %v388_v48, %v298_v46  ;;  %445 = vrot.lane.b32.xlu1 %v388_v48, %s948_s7 }
 0x12c   : > { %v412_v51 = vadd.f32 %v1120_v37, %v403_v49 }
 0x12e   : > { %418 = vst.msk [vmem:[%s1125_s8 + $0x10] sm:$0xff] %vm256_vm0, %v412_v51 }
 0x12f   : > { %431 = vst.msk [vmem:[%s1125_s8 + $0x10] sm:$0xff] %vm428_vm1, %v424_v50 }
 0x131   : > { %v391_v53 = vpop.f32.mrf.mxu3 }
 0x132   : > { %v404_v54 = vadd.f32 %v391_v53, %v301_v52  ;;  %447 = vrot.lane.b32.xlu1 %v391_v53, %s948_s7 }
 0x134   : > { %v413_v56 = vadd.f32 %v1120_v37, %v404_v54 }
 0x136   : > { %419 = vst.msk [vmem:[%s1125_s8 + $0x18] sm:$0xff] %vm256_vm0, %v413_v56 }
 0x137   : > { %432 = vst.msk [vmem:[%s1125_s8 + $0x18] sm:$0xff] %vm428_vm1, %v425_v55 }
 0x139   : > { %v394_v58 = vpop.f32.mrf.mxu3 }
 0x13a   : > { %449 = vrot.lane.b32.xlu2 %v394_v58, %s948_s7  ;;  %v405_v59 = vadd.f32 %v394_v58, %v304_v57 }
 0x13c   : > { %v414_v61 = vadd.f32 %v1120_v37, %v405_v59 }
 0x13e   : > { %420 = vst.msk [vmem:[%s1125_s8 + $0x20] sm:$0xff] %vm256_vm0, %v414_v61 }
 0x13f   : > { %433 = vst.msk [vmem:[%s1125_s8 + $0x20] sm:$0xff] %vm428_vm1, %v426_v60 }
 0x141   : > { %v397_v63 = vpop.f32.mrf.mxu3 }
 0x142   : > { %451 = vrot.lane.b32.xlu2 %v397_v63, %s948_s7  ;;  %v406_v0 = vadd.f32 %v397_v63, %v307_v62 }
 0x144   : > { %v415_v2 = vadd.f32 %v1120_v37, %v406_v0 }
 0x146   : > { %421 = vst.msk [vmem:[%s1125_s8 + $0x28] sm:$0xff] %vm256_vm0, %v415_v2 }
 0x147   : > { %434 = vst.msk [vmem:[%s1125_s8 + $0x28] sm:$0xff] %vm428_vm1, %v427_v1 }
 0x18c   : > { %v442_v3 = vpop.permute.xlu0 %441 }
 0x18d   : > { %v459_v4 = vadd.f32 %v442_v3, %v292_v36 }
 0x18f   : > { %v465_v5 = vadd.f32 %v1120_v37, %v459_v4 }
 0x191   : > { %472 = vst.msk [vmem:[%s1125_s8] sm:$0xff] %vm471_vm2, %v465_v5 }
 0x194   : > { %v444_v6 = vpop.permute.xlu0 %443  ;;  %v450_v7 = vpop.permute.xlu2 %449 }
 0x195   : > { %v460_v8 = vadd.f32 %v444_v6, %v295_v39  ;;  %v463_v9 = vadd.f32 %v450_v7, %v304_v57 }
 0x197   : > { %v466_v10 = vadd.f32 %v1120_v37, %v460_v8  ;;  %v469_v11 = vadd.f32 %v1120_v37, %v463_v9 }
 0x199   : > { %473 = vst.msk [vmem:[%s1125_s8 + $0x8] sm:$0xff] %vm471_vm2, %v466_v10 }
 0x19a   : > { %476 = vst.msk [vmem:[%s1125_s8 + $0x20] sm:$0xff] %vm471_vm2, %v469_v11 }
 0x19c   : > { %v446_v12 = vpop.permute.xlu1 %445  ;;  %v452_v13 = vpop.permute.xlu2 %451 }
 0x19d   : > { %v461_v14 = vadd.f32 %v446_v12, %v298_v46  ;;  %v464_v15 = vadd.f32 %v452_v13, %v307_v62 }
 0x19f   : > { %v467_v16 = vadd.f32 %v1120_v37, %v461_v14  ;;  %v470_v17 = vadd.f32 %v1120_v37, %v464_v15 }
 0x1a1   : > { %474 = vst.msk [vmem:[%s1125_s8 + $0x10] sm:$0xff] %vm471_vm2, %v467_v16 }
 0x1a2   : > { %477 = vst.msk [vmem:[%s1125_s8 + $0x28] sm:$0xff] %vm471_vm2, %v470_v17 }
 0x1a4   : > { %v448_v18 = vpop.permute.xlu1 %447 }
 0x1a5   : > { %v462_v19 = vadd.f32 %v448_v18, %v301_v52  ;;  %484 = sbr.rel (!%p1004_p4) target bundleno = 480 (0x1e0), region = 44 }
 0x1a7   : > { %v468_v20 = vadd.f32 %v1120_v37, %v462_v19 }
 0x1a9   : > { %475 = vst.msk [vmem:[%s1125_s8 + $0x18] sm:$0xff] %vm471_vm2, %v468_v20 }
 0x1aa   : > { %s1258_s18 = smov (!%p487_p8, %s486_s18), 6 }
 0x1ab   : > { %s733_s13 = sshll.u32 %s1258_s18, 3 }
 0x1ac   : > { %p736_p9 = scmp.eq.s32.totalorder %s733_s13, 0 }
 0x1ad   : > { %854 = sdivrem.u32 (!%p736_p9), %s1258_s18, 6 }
 0x1ae   : > { %495 = sbr.rel (%p736_p9) target bundleno = 480 (0x1e0), region = 48 }
 0x1b6   : > { %s1197_s26 = spop.drf %854 }
 0x1b7   : > { %s856_s14 = spop.drf %854  ;;  %p737_p10 = scmp.le.s32.totalorder %s1197_s26, 0 }
 0x1b8   : > { %s1251_s21 = smov (!%p737_p10), %s1191_s12  ;;  %s1252_s6 = smov (!%p737_p10), %s1125_s8 }
 0x1b9   : > { %672 = sbr.rel (%p737_p10) target bundleno = 454 (0x1c6), region = 124  ;;  %s1206_s16 = smov (!%p737_p10), 0  }
 0x1ba   : > { %s1208_s17 = smov (!%p737_p10), 0  }
 0x1be LB: >> { %v570_v21 = vld [vmem:[%s922_s6] sm:$0xff]  ;;  %v572_v22 = vld [vmem:[%s922_s6 + $0x8] sm:$0xff]  ;;  %v574_v23 = vld [vmem:[%s922_s6 + $0x10] sm:$0xff]  ;;  %s582_s20 = sadd.s32 1, %s926_s16  ;;  %s564_s17 = sadd.s32 1, %s930_s17   ;;  %s930_s17 = sphi %s1208_s17, %s564_s17   ;;  %s926_s16 = sphi %s1206_s16, %s1253_s16   ;;  %s922_s6 = sphi %s1252_s6, %s587_s6   ;;  %s918_s21 = sphi %s1251_s21, %s588_s21  }
 0x1bf   : >> { %571 = vst [vmem:[%s918_s21] sm:$0xff] %v570_v21  ;;  %v576_v24 = vld [vmem:[%s922_s6 + $0x18] sm:$0xff]  ;;  %p583_p11 = scmp.ge.s32.totalorder %s582_s20, %s1197_s26  ;;  %v578_v25 = vld [vmem:[%s922_s6 + $0x20] sm:$0xff]  ;;  %v580_v26 = vld [vmem:[%s922_s6 + $0x28] sm:$0xff]  ;;  %p563_p12 = scmp.ge.s32.totalorder %s564_s17, %s1197_s26 }
 0x1c0   : >> { %573 = vst [vmem:[%s918_s21 + $0x8] sm:$0xff] %v572_v22 }
 0x1c1   : >> { %575 = vst [vmem:[%s918_s21 + $0x10] sm:$0xff] %v574_v23  ;;  %s1260_s20 = smov (%p583_p11, %s582_s20), 0  ;;  %566 = sbr.rel (!%p563_p12) target bundleno = 446 (0x1be), region = 130 }
 0x1c2   : >> { %577 = vst [vmem:[%s918_s21 + $0x18] sm:$0xff] %v576_v24  ;;  %s585_s23 = smul.u32 48, %s1260_s20  ;;  %s1253_s16 = smov %s1260_s20 }
 0x1c3   : >> { %579 = vst [vmem:[%s918_s21 + $0x20] sm:$0xff] %v578_v25 }
 0x1c4   : >> { %581 = vst [vmem:[%s918_s21 + $0x28] sm:$0xff] %v580_v26  ;;  %s587_s6 = scalar_lea.vmem %s1125_s8, %s585_s23 [#allocation2]   ;;  %s588_s21 = scalar_lea.vmem %s1191_s12, %s585_s23  }
 0x1c6 PF: > { %857 = sdivrem.u32 %s1258_s18, 6 }
 0x1c7   : > { %s738_s15 = smul.u32 48, %s1197_s26 }
 0x1c9   : > { %s1229_s24 = scalar_lea.vmem %s1125_s8, %s738_s15 [#allocation2]   ;;  %s595_s27 = scalar_lea.vmem %s1191_s12, %s738_s15  }
 0x1cf   : > { %s858_s28 = spop.drf %857 }
 0x1d0   : > { %s859_s29 = spop.drf %857 }
 0x1d1   : > { %p740_p13 = scmp.le.s32.totalorder %s859_s29, 0 }
 0x1d2   : > { %s932_s30 = smov (!%p740_p13), %s595_s27   ;;  %s936_s7 = smov (!%p740_p13), %s1229_s24  }
 0x1d3   : > { %686 = sbr.rel (%p740_p13) target bundleno = 480 (0x1e0), region = 135  ;;  %s940_s9 = smov (!%p740_p13), 0  }
 0x1d4   : > { %s944_s10 = smov (!%p740_p13), 0  }
 0x1d8 LB: >> { %v605_v27 = vld [vmem:[%s938_s7] sm:$0xff]  ;;  %s607_s8 = sadd.s32 1, %s942_s9  ;;  %s599_s10 = sadd.s32 1, %s946_s10   ;;  %s946_s10 = sphi %s944_s10, %s599_s10   ;;  %s942_s9 = sphi %s940_s9, %s941_s9   ;;  %s938_s7 = sphi %s936_s7, %s612_s7   ;;  %s934_s30 = sphi %s932_s30, %s613_s30  }
 0x1d9   : >> { %606 = vst [vmem:[%s934_s30] sm:$0xff] %v605_v27  ;;  %p608_p0 = scmp.ge.s32.totalorder %s607_s8, %s859_s29  ;;  %p598_p1 = scmp.ge.s32.totalorder %s599_s10, %s859_s29 }
 0x1db   : >> { %s1262_s8 = smov (%p608_p0, %s607_s8), 0  ;;  %601 = sbr.rel (!%p598_p1) target bundleno = 472 (0x1d8), region = 141 }
 0x1dc   : >> { %s741_s18 = sshll.u32 %s1262_s8, 3  ;;  %s941_s9 = smov %s1262_s8  }
 0x1dd   : >> { %s612_s7 = scalar_lea.vmem %s1229_s24, %s741_s18 [#allocation2]   ;;  %s613_s30 = scalar_lea.vmem %s595_s27, %s741_s18  }
 0x1e0 PF: > { %p12_p2 = scmp.ge.s32.totalorder %s994_s22, 5   ;;  %s1254_s18 = smov %s910_s19 }
 0x1e1   : > { %s1255_s19 = smov %s1002_s25  ;;  %s1256_s20 = smov %s994_s22 }
 0x1e2   :  { %14 = sbr.rel (!%p12_p2) target bundleno = 2 (0x2), region = 152 }

// kernel: tpu_custom_call.1
= control target key start
LH: loop header
LB: loop body
LE: loop exit
PB: predicated region body
PF: predicated region fallthrough
CT: control target
= control target key end

     0   :  { %s979_s18 = smov 0   ;;  %s981_s19 = smov 0   ;;  %s1244_s0 = inlined_call_operand.vmem [shape: f32[128,32], index: 0, kind: input, shape index: {}]   ;;  %s1245_s1 = inlined_call_operand.vmem [shape: f32[32,96], index: 1, kind: input, shape index: {}]   ;;  %s1246_s2 = inlined_call_operand.vmem [shape: f32[1,96], index: 2, kind: input, shape index: {}]   ;;  %s1247_s3 = inlined_call_operand.vmem [shape: f32[32,128], index: 3, kind: input, shape index: {}]   ;;  %s1248_s4 = inlined_call_operand.vmem [shape: f32[128,64], index: 4, kind: input, shape index: {}]   ;;  %s1249_s5 = inlined_call_operand.vmem [shape: f32[128,96], index: 5, kind: output, shape index: {}]  }
   0x1   :  { %s983_s20 = smov 0  }
   0x2 LB: > { %s992_s21 = sadd.s32 4294967295, %s914_s20   ;;  %s994_s22 = sadd.s32 1, %s914_s20   ;;  %s914_s20 = sphi %s983_s20, %s1256_s20   ;;  %s910_s19 = sphi %s981_s19, %s1255_s19   ;;  %s906_s18 = sphi %s979_s18, %s1254_s18  }
   0x3   : > { %s129_s23 = ssub.s32 %s914_s20, %s994_s22  ;;  %s132_s24 = sadd.s32 1, %s910_s19 }
   0x4   : > { %p130_p0 = scmp.eq.s32.totalorder %s129_s23, 0  ;;  %p142_p1 = scmp.ne.s32.totalorder %s910_s19, %s906_s18 }
   0x5   : > { %p143_p2 = scmp.eq.s32.totalorder %s992_s21, 2  ;;  %p719_p3 = scmp.ge.s32.totalorder %s914_s20, 1 }
   0x6   : > { %s1002_s25 = scalar_select %p130_p0, %s910_s19, %s132_s24  }
   0x7   : > { %p1004_p4 = por %p143_p2, %p142_p1  ;;  %p196_p5 = scmp.lt.s32.totalorder %s914_s20, 4 }
   0x9   : > { %p197_p6 = pnand %p719_p3, %p196_p5 }
   0xa   : > { %s1015_s6 = smul.u32 (!%p197_p6), 6, %s992_s21  ;;  %s224_s27 = sand.u32 (!%p197_p6), 1, %s906_s18  }
   0xb   : > { %200 = sbr.rel (%p197_p6) target bundleno = 480 (0x1e0), region = 40  ;;  %s948_s7 = smov (!%p197_p6), 32  }
   0xc   : > { %p232_p7 = scmp.lt.s32.totalorder (!%p197_p6), %s1015_s6, 15  ;;  %s762_s28 = smul.u32 (!%p197_p6), 48, %s224_s27 }
   0xe   : > { %s1125_s8 = scalar_lea.vmem (!%p197_p6), [#allocation2], %s762_s28  }
  0x10   : > { %v313_v0 = vld [vmem:[%s1247_s3 + $0x18] sm:$0xff]  ;;  %v312_v1 = vld [vmem:[%s1247_s3 + $0x10] sm:$0xff]  ;;  %v311_v2 = vld [vmem:[%s1247_s3 + $0x8] sm:$0xff]  ;;  %s233_s11 = scalar_select %p232_p7, %s1015_s6, 15  ;;  %vm256_vm0 = vcmask 261120   ;;  %vm428_vm1 = vcmask 523520  }
  0x11   : > { %326 = vmatpush.msra.mxu1 %v313_v0  ;;  %v310_v3 = vld [vmem:[%s1247_s3] sm:$0xff]  ;;  %v364_v6 = vld [vmem:[%s1248_s4 + $0x78] sm:$0xff]  ;;  %v363_v7 = vld [vmem:[%s1248_s4 + $0x70] sm:$0xff]  ;;  %vm471_vm2 = vcmask 785920   ;;  %s486_s18 = ssub.s32 (%p1004_p4), 16, %s1015_s6  ;;  %s745_s9 = smul.u32 (%p1004_p4), 48, %s992_s21 }
  0x12   : > { %s720_s12 = sshll.u32 %s233_s11, 3  ;;  %365 = vmatpush.msra.mxu2 %v364_v6  ;;  %746 = vmatpush.msra.mxu3 %v364_v6  ;;  %v362_v8 = vld [vmem:[%s1248_s4 + $0x68] sm:$0xff]  ;;  %v361_v9 = vld [vmem:[%s1248_s4 + $0x60] sm:$0xff]  ;;  %v255_v11 = vld [vmem:[%s1245_s1 + $0x18] sm:$0xff]  ;;  %p487_p8 = scmp.lt.s32.totalorder (%p1004_p4), %s486_s18, 6 }
  0x13   : > { %327 = vmatpush.msra.mxu1 %v312_v1  ;;  %s1028_s15 = scalar_lea.vmem %s1244_s0, %s720_s12  ;;  %v360_v12 = vld [vmem:[%s1248_s4 + $0x58] sm:$0xff]  ;;  %287 = vmatpush.msra.mxu0 %v255_v11  ;;  %v359_v13 = vld [vmem:[%s1248_s4 + $0x50] sm:$0xff]  ;;  %v358_v14 = vld [vmem:[%s1248_s4 + $0x48] sm:$0xff]  ;;  %s1191_s12 = scalar_lea.vmem (%p1004_p4), %s1249_s5, %s745_s9  }
  0x14   : > { %v1031_v4 = vld [vmem:[%s1028_s15] sm:$0xff]  ;;  %v1036_v5 = vld [vmem:[%s1028_s15 + $0x8] sm:$0xff]  ;;  %366 = vmatpush.msra.mxu2 %v363_v7  ;;  %747 = vmatpush.msra.mxu3 %v363_v7  ;;  %v248_v10 = vld [vmem:[%s1028_s15 + $0x10] sm:$0xff] }
  0x15   : > { %328 = vmatpush.msra.mxu1 %v311_v2  ;;  %v357_v15 = vld [vmem:[%s1248_s4 + $0x40] sm:$0xff]  ;;  %v249_v16 = vld [vmem:[%s1028_s15 + $0x18] sm:$0xff]  ;;  %v355_v18 = vld [vmem:[%s1248_s4 + $0x30] sm:$0xff] }
  0x16   : > { %367 = vmatpush.msra.mxu2 %v362_v8  ;;  %748 = vmatpush.msra.mxu3 %v362_v8  ;;  %v356_v17 = vld [vmem:[%s1248_s4 + $0x38] sm:$0xff]  ;;  %v354_v19 = vld [vmem:[%s1248_s4 + $0x28] sm:$0xff]  ;;  %v353_v20 = vld [vmem:[%s1248_s4 + $0x20] sm:$0xff] }
  0x17   : > { %329 = vmatpush.msra.mxu1 %v310_v3  ;;  %v250_v21 = vld [vmem:[%s1028_s15 + $0x20] sm:$0xff]  ;;  %v352_v22 = vld [vmem:[%s1248_s4 + $0x18] sm:$0xff]  ;;  %v351_v23 = vld [vmem:[%s1248_s4 + $0x10] sm:$0xff] }
  0x18   : > { %727 = vmatmul.msk.f32.vlgmr.msra.gmra.mxu1 %vm256_vm0, %v1031_v4  ;;  %368 = vmatpush.msra.mxu2 %v361_v9  ;;  %v350_v24 = vld [vmem:[%s1248_s4 + $0x8] sm:$0xff]  ;;  %v349_v26 = vld [vmem:[%s1248_s4] sm:$0xff]  ;;  %v254_v27 = vld [vmem:[%s1245_s1 + $0x10] sm:$0xff] }
  0x19   : > { %749 = vmatpush.msra.mxu3 %v361_v9  ;;  %v251_v25 = vld [vmem:[%s1028_s15 + $0x28] sm:$0xff]  ;;  %288 = vmatpush.msra.mxu0 %v254_v27  ;;  %v252_v29 = vld [vmem:[%s1245_s1] sm:$0xff] }
  0x1a   : > { %369 = vmatpush.msra.mxu2 %v360_v12  ;;  %v253_v28 = vld [vmem:[%s1245_s1 + $0x8] sm:$0xff]  ;;  %v1120_v37 = vld [vmem:[%s1246_s2] ss:$0 sm:$0xff] }
  0x1b   : > { %750 = vmatpush.msra.mxu3 %v360_v12  ;;  %289 = vmatpush.msra.mxu0 %v253_v28 }
  0x1c   : > { %370 = vmatpush.msra.mxu2 %v359_v13 }
  0x1d   : > { %751 = vmatpush.msra.mxu3 %v359_v13  ;;  %290 = vmatpush.msra.mxu0 %v252_v29 }
  0x1e   : > { %371 = vmatpush.msra.mxu2 %v358_v14  ;;  %721 = vmatmul.msk.f32.vlgmr.msra.gmra.mxu0 %vm256_vm0, %v1031_v4 }
  0x1f   : > { %752 = vmatpush.msra.mxu3 %v358_v14 }
  0x20   : > { %728 = vmatmul.msk.f32.gmra.mxu1 %vm256_vm0, %v1036_v5  ;;  %372 = vmatpush.msra.mxu2 %v357_v15 }
  0x21   : > { %753 = vmatpush.msra.mxu3 %v357_v15 }
  0x22   : > { %373 = vmatpush.msra.mxu2 %v356_v17 }
  0x23   : > { %754 = vmatpush.msra.mxu3 %v356_v17 }
  0x24   : > { %374 = vmatpush.msra.mxu2 %v355_v18 }
  0x25   : > { %755 = vmatpush.msra.mxu3 %v355_v18 }
  0x26   : > { %375 = vmatpush.msra.mxu2 %v354_v19  ;;  %722 = vmatmul.msk.f32.gmra.mxu0 %vm256_vm0, %v1036_v5 }
  0x27   : > { %756 = vmatpush.msra.mxu3 %v354_v19 }
  0x28   : > { %729 = vmatmul.msk.f32.gmra.mxu1 %vm256_vm0, %v248_v10  ;;  %376 = vmatpush.msra.mxu2 %v353_v20 }
  0x29   : > { %757 = vmatpush.msra.mxu3 %v353_v20 }
  0x2a   : > { %377 = vmatpush.msra.mxu2 %v352_v22 }
  0x2b   : > { %758 = vmatpush.msra.mxu3 %v352_v22 }
  0x2c   : > { %378 = vmatpush.msra.mxu2 %v351_v23 }
  0x2d   : > { %759 = vmatpush.msra.mxu3 %v351_v23 }
  0x2e   : > { %379 = vmatpush.msra.mxu2 %v350_v24  ;;  %723 = vmatmul.msk.f32.gmra.mxu0 %vm256_vm0, %v248_v10 }
  0x2f   : > { %760 = vmatpush.msra.mxu3 %v350_v24 }
  0x30   : > { %730 = vmatmul.msk.f32.gmra.mxu1 %vm256_vm0, %v249_v16  ;;  %380 = vmatpush.msra.mxu2 %v349_v26 }
  0x31   : > { %761 = vmatpush.msra.mxu3 %v349_v26 }
  0x36   : > { %724 = vmatmul.msk.f32.gmra.mxu0 %vm256_vm0, %v249_v16 }
  0x38   : > { %731 = vmatmul.msk.f32.gmra.mxu1 %vm256_vm0, %v250_v21 }
  0x3e   : > { %725 = vmatmul.msk.f32.gmra.mxu0 %vm256_vm0, %v250_v21 }
  0x40   : > { %732 = vmatmul.msk.f32.gmra.mxu1 %vm256_vm0, %v251_v25 }
  0x46   : > { %726 = vmatmul.msk.f32.gmra.mxu0 %vm256_vm0, %v251_v25 }
  0x95   : > { %v331_v30 = vpop.f32.mrf.mxu1 }
  0x96   : > { %381 = vmatmul.f32.vlgmr.msra.gmra.mxu2 %v331_v30 }
  0x9b   : > { %v292_v36 = vpop.f32.mrf.mxu0 }
  0x9c   : > { %v422_v41 = vadd.f32 %v1120_v37, %v292_v36 }
  0x9d   : > { %v334_v31 = vpop.f32.mrf.mxu1 }
  0x9e   : > { %384 = vmatmul.f32.gmra.mxu2 %v334_v31 }
  0xa3   : > { %v295_v39 = vpop.f32.mrf.mxu0 }
  0xa4   : > { %v423_v45 = vadd.f32 %v1120_v37, %v295_v39 }
  0xa5   : > { %v337_v32 = vpop.f32.mrf.mxu1 }
  0xa6   : > { %387 = vmatmul.f32.gmra.mxu2 %v337_v32 }
  0xab   : > { %v298_v46 = vpop.f32.mrf.mxu0 }
  0xac   : > { %v424_v50 = vadd.f32 %v1120_v37, %v298_v46 }
  0xad   : > { %v340_v33 = vpop.f32.mrf.mxu1 }
  0xae   : > { %390 = vmatmul.f32.vlgmr.msra.gmra.mxu3 %v340_v33 }
  0xb3   : > { %v301_v52 = vpop.f32.mrf.mxu0 }
  0xb4   : > { %v425_v55 = vadd.f32 %v1120_v37, %v301_v52 }
  0xb5   : > { %v343_v34 = vpop.f32.mrf.mxu1 }
  0xb6   : > { %393 = vmatmul.f32.gmra.mxu3 %v343_v34 }
  0xbb   : > { %v304_v57 = vpop.f32.mrf.mxu0 }
  0xbc   : > { %v426_v60 = vadd.f32 %v1120_v37, %v304_v57 }
  0xbd   : > { %v346_v35 = vpop.f32.mrf.mxu1 }
  0xbe   : > { %396 = vmatmul.f32.gmra.mxu3 %v346_v35 }
  0xc3   : > { %v307_v62 = vpop.f32.mrf.mxu0 }
  0xc4   : > { %v427_v1 = vadd.f32 %v1120_v37, %v307_v62 }
 0x119   : > { %v382_v38 = vpop.f32.mrf.mxu2 }
 0x11a   : > { %v401_v40 = vadd.f32 %v382_v38, %v292_v36  ;;  %441 = vrot.lane.b32.xlu0 %v382_v38, %s948_s7 }
 0x11c   : > { %v410_v42 = vadd.f32 %v1120_v37, %v401_v40 }
 0x11e   : > { %416 = vst.msk [vmem:[%s1125_s8] sm:$0xff] %vm256_vm0, %v410_v42 }
 0x11f   : > { %429 = vst.msk [vmem:[%s1125_s8] sm:$0xff] %vm428_vm1, %v422_v41 }
 0x121   : > { %v385_v43 = vpop.f32.mrf.mxu2 }
 0x122   : > { %v402_v44 = vadd.f32 %v385_v43, %v295_v39  ;;  %443 = vrot.lane.b32.xlu0 %v385_v43, %s948_s7 }
 0x124   : > { %v411_v47 = vadd.f32 %v1120_v37, %v402_v44 }
 0x126   : > { %417 = vst.msk [vmem:[%s1125_s8 + $0x8] sm:$0xff] %vm256_vm0, %v411_v47 }
 0x127   : > { %430 = vst.msk [vmem:[%s1125_s8 + $0x8] sm:$0xff] %vm428_vm1, %v423_v45 }
 0x129   : > { %v388_v48 = vpop.f32.mrf.mxu2 }
 0x12a   : > { %v403_v49 = vadd.f32 %v388_v48, %v298_v46  ;;  %445 = vrot.lane.b32.xlu1 %v388_v48, %s948_s7 }
 0x12c   : > { %v412_v51 = vadd.f32 %v1120_v37, %v403_v49 }
 0x12e   : > { %418 = vst.msk [vmem:[%s1125_s8 + $0x10] sm:$0xff] %vm256_vm0, %v412_v51 }
 0x12f   : > { %431 = vst.msk [vmem:[%s1125_s8 + $0x10] sm:$0xff] %vm428_vm1, %v424_v50 }
 0x131   : > { %v391_v53 = vpop.f32.mrf.mxu3 }
 0x132   : > { %v404_v54 = vadd.f32 %v391_v53, %v301_v52  ;;  %447 = vrot.lane.b32.xlu1 %v391_v53, %s948_s7 }
 0x134   : > { %v413_v56 = vadd.f32 %v1120_v37, %v404_v54 }
 0x136   : > { %419 = vst.msk [vmem:[%s1125_s8 + $0x18] sm:$0xff] %vm256_vm0, %v413_v56 }
 0x137   : > { %432 = vst.msk [vmem:[%s1125_s8 + $0x18] sm:$0xff] %vm428_vm1, %v425_v55 }
 0x139   : > { %v394_v58 = vpop.f32.mrf.mxu3 }
 0x13a   : > { %449 = vrot.lane.b32.xlu2 %v394_v58, %s948_s7  ;;  %v405_v59 = vadd.f32 %v394_v58, %v304_v57 }
 0x13c   : > { %v414_v61 = vadd.f32 %v1120_v37, %v405_v59 }
 0x13e   : > { %420 = vst.msk [vmem:[%s1125_s8 + $0x20] sm:$0xff] %vm256_vm0, %v414_v61 }
 0x13f   : > { %433 = vst.msk [vmem:[%s1125_s8 + $0x20] sm:$0xff] %vm428_vm1, %v426_v60 }
 0x141   : > { %v397_v63 = vpop.f32.mrf.mxu3 }
 0x142   : > { %451 = vrot.lane.b32.xlu2 %v397_v63, %s948_s7  ;;  %v406_v0 = vadd.f32 %v397_v63, %v307_v62 }
 0x144   : > { %v415_v2 = vadd.f32 %v1120_v37, %v406_v0 }
 0x146   : > { %421 = vst.msk [vmem:[%s1125_s8 + $0x28] sm:$0xff] %vm256_vm0, %v415_v2 }
 0x147   : > { %434 = vst.msk [vmem:[%s1125_s8 + $0x28] sm:$0xff] %vm428_vm1, %v427_v1 }
 0x18c   : > { %v442_v3 = vpop.permute.xlu0 %441 }
 0x18d   : > { %v459_v4 = vadd.f32 %v442_v3, %v292_v36 }
 0x18f   : > { %v465_v5 = vadd.f32 %v1120_v37, %v459_v4 }
 0x191   : > { %472 = vst.msk [vmem:[%s1125_s8] sm:$0xff] %vm471_vm2, %v465_v5 }
 0x194   : > { %v444_v6 = vpop.permute.xlu0 %443  ;;  %v450_v7 = vpop.permute.xlu2 %449 }
 0x195   : > { %v460_v8 = vadd.f32 %v444_v6, %v295_v39  ;;  %v463_v9 = vadd.f32 %v450_v7, %v304_v57 }
 0x197   : > { %v466_v10 = vadd.f32 %v1120_v37, %v460_v8  ;;  %v469_v11 = vadd.f32 %v1120_v37, %v463_v9 }
 0x199   : > { %473 = vst.msk [vmem:[%s1125_s8 + $0x8] sm:$0xff] %vm471_vm2, %v466_v10 }
 0x19a   : > { %476 = vst.msk [vmem:[%s1125_s8 + $0x20] sm:$0xff] %vm471_vm2, %v469_v11 }
 0x19c   : > { %v446_v12 = vpop.permute.xlu1 %445  ;;  %v452_v13 = vpop.permute.xlu2 %451 }
 0x19d   : > { %v461_v14 = vadd.f32 %v446_v12, %v298_v46  ;;  %v464_v15 = vadd.f32 %v452_v13, %v307_v62 }
 0x19f   : > { %v467_v16 = vadd.f32 %v1120_v37, %v461_v14  ;;  %v470_v17 = vadd.f32 %v1120_v37, %v464_v15 }
 0x1a1   : > { %474 = vst.msk [vmem:[%s1125_s8 + $0x10] sm:$0xff] %vm471_vm2, %v467_v16 }
 0x1a2   : > { %477 = vst.msk [vmem:[%s1125_s8 + $0x28] sm:$0xff] %vm471_vm2, %v470_v17 }
 0x1a4   : > { %v448_v18 = vpop.permute.xlu1 %447 }
 0x1a5   : > { %v462_v19 = vadd.f32 %v448_v18, %v301_v52  ;;  %484 = sbr.rel (!%p1004_p4) target bundleno = 480 (0x1e0), region = 44 }
 0x1a7   : > { %v468_v20 = vadd.f32 %v1120_v37, %v462_v19 }
 0x1a9   : > { %475 = vst.msk [vmem:[%s1125_s8 + $0x18] sm:$0xff] %vm471_vm2, %v468_v20 }
 0x1aa   : > { %s1258_s18 = smov (!%p487_p8, %s486_s18), 6 }
 0x1ab   : > { %s733_s13 = sshll.u32 %s1258_s18, 3 }
 0x1ac   : > { %p736_p9 = scmp.eq.s32.totalorder %s733_s13, 0 }
 0x1ad   : > { %854 = sdivrem.u32 (!%p736_p9), %s1258_s18, 6 }
 0x1ae   : > { %495 = sbr.rel (%p736_p9) target bundleno = 480 (0x1e0), region = 48 }
 0x1b6   : > { %s1197_s26 = spop.drf %854 }
 0x1b7   : > { %s856_s14 = spop.drf %854  ;;  %p737_p10 = scmp.le.s32.totalorder %s1197_s26, 0 }
 0x1b8   : > { %s1251_s21 = smov (!%p737_p10), %s1191_s12  ;;  %s1252_s6 = smov (!%p737_p10), %s1125_s8 }
 0x1b9   : > { %672 = sbr.rel (%p737_p10) target bundleno = 454 (0x1c6), region = 124  ;;  %s1206_s16 = smov (!%p737_p10), 0  }
 0x1ba   : > { %s1208_s17 = smov (!%p737_p10), 0  }
 0x1be LB: >> { %v570_v21 = vld [vmem:[%s922_s6] sm:$0xff]  ;;  %v572_v22 = vld [vmem:[%s922_s6 + $0x8] sm:$0xff]  ;;  %v574_v23 = vld [vmem:[%s922_s6 + $0x10] sm:$0xff]  ;;  %s582_s20 = sadd.s32 1, %s926_s16  ;;  %s564_s17 = sadd.s32 1, %s930_s17   ;;  %s930_s17 = sphi %s1208_s17, %s564_s17   ;;  %s926_s16 = sphi %s1206_s16, %s1253_s16   ;;  %s922_s6 = sphi %s1252_s6, %s587_s6   ;;  %s918_s21 = sphi %s1251_s21, %s588_s21  }
 0x1bf   : >> { %571 = vst [vmem:[%s918_s21] sm:$0xff] %v570_v21  ;;  %v576_v24 = vld [vmem:[%s922_s6 + $0x18] sm:$0xff]  ;;  %p583_p11 = scmp.ge.s32.totalorder %s582_s20, %s1197_s26  ;;  %v578_v25 = vld [vmem:[%s922_s6 + $0x20] sm:$0xff]  ;;  %v580_v26 = vld [vmem:[%s922_s6 + $0x28] sm:$0xff]  ;;  %p563_p12 = scmp.ge.s32.totalorder %s564_s17, %s1197_s26 }
 0x1c0   : >> { %573 = vst [vmem:[%s918_s21 + $0x8] sm:$0xff] %v572_v22 }
 0x1c1   : >> { %575 = vst [vmem:[%s918_s21 + $0x10] sm:$0xff] %v574_v23  ;;  %s1260_s20 = smov (%p583_p11, %s582_s20), 0  ;;  %566 = sbr.rel (!%p563_p12) target bundleno = 446 (0x1be), region = 130 }
 0x1c2   : >> { %577 = vst [vmem:[%s918_s21 + $0x18] sm:$0xff] %v576_v24  ;;  %s585_s23 = smul.u32 48, %s1260_s20  ;;  %s1253_s16 = smov %s1260_s20 }
 0x1c3   : >> { %579 = vst [vmem:[%s918_s21 + $0x20] sm:$0xff] %v578_v25 }
 0x1c4   : >> { %581 = vst [vmem:[%s918_s21 + $0x28] sm:$0xff] %v580_v26  ;;  %s587_s6 = scalar_lea.vmem %s1125_s8, %s585_s23 [#allocation2]   ;;  %s588_s21 = scalar_lea.vmem %s1191_s12, %s585_s23  }
 0x1c6 PF: > { %857 = sdivrem.u32 %s1258_s18, 6 }
 0x1c7   : > { %s738_s15 = smul.u32 48, %s1197_s26 }
 0x1c9   : > { %s1229_s24 = scalar_lea.vmem %s1125_s8, %s738_s15 [#allocation2]   ;;  %s595_s27 = scalar_lea.vmem %s1191_s12, %s738_s15  }
 0x1cf   : > { %s858_s28 = spop.drf %857 }
 0x1d0   : > { %s859_s29 = spop.drf %857 }
 0x1d1   : > { %p740_p13 = scmp.le.s32.totalorder %s859_s29, 0 }
 0x1d2   : > { %s932_s30 = smov (!%p740_p13), %s595_s27   ;;  %s936_s7 = smov (!%p740_p13), %s1229_s24  }
 0x1d3   : > { %686 = sbr.rel (%p740_p13) target bundleno = 480 (0x1e0), region = 135  ;;  %s940_s9 = smov (!%p740_p13), 0  }
 0x1d4   : > { %s944_s10 = smov (!%p740_p13), 0  }
 0x1d8 LB: >> { %v605_v27 = vld [vmem:[%s938_s7] sm:$0xff]  ;;  %s607_s8 = sadd.s32 1, %s942_s9  ;;  %s599_s10 = sadd.s32 1, %s946_s10   ;;  %s946_s10 = sphi %s944_s10, %s599_s10   ;;  %s942_s9 = sphi %s940_s9, %s941_s9   ;;  %s938_s7 = sphi %s936_s7, %s612_s7   ;;  %s934_s30 = sphi %s932_s30, %s613_s30  }
 0x1d9   : >> { %606 = vst [vmem:[%s934_s30] sm:$0xff] %v605_v27  ;;  %p608_p0 = scmp.ge.s32.totalorder %s607_s8, %s859_s29  ;;  %p598_p1 = scmp.ge.s32.totalorder %s599_s10, %s859_s29 }
 0x1db   : >> { %s1262_s8 = smov (%p608_p0, %s607_s8), 0  ;;  %601 = sbr.rel (!%p598_p1) target bundleno = 472 (0x1d8), region = 141 }
 0x1dc   : >> { %s741_s18 = sshll.u32 %s1262_s8, 3  ;;  %s941_s9 = smov %s1262_s8  }
 0x1dd   : >> { %s612_s7 = scalar_lea.vmem %s1229_s24, %s741_s18 [#allocation2]   ;;  %s613_s30 = scalar_lea.vmem %s595_s27, %s741_s18  }
 0x1e0 PF: > { %p12_p2 = scmp.ge.s32.totalorder %s994_s22, 5   ;;  %s1254_s18 = smov %s910_s19 }
 0x1e1   : > { %s1255_s19 = smov %s1002_s25  ;;  %s1256_s20 = smov %s994_s22 }
 0x1e2   :  { %14 = sbr.rel (!%p12_p2) target bundleno = 2 (0x2), region = 152 }

</bundles_post_ra>
